<compile_context>
chip_gen: v7x
topology: tpu7x:2x2x1
jax: 0.10.0
libtpu: 0.0.40
codegen_flags: <defaults>
</compile_context>

<pallas_src>
import functools

import jax
import jax.numpy as jnp
from jax.experimental import pallas as pl
from jax.experimental.pallas import tpu as pltpu


_MEGACORE_SPLIT_MIN_ELEMS = 512 * 1024    # only force >=2 grid steps above this
_VMEM_MARGIN_BYTES = 2 * 1024 * 1024


# --------------------------------------------------------------------------
# Hardware / VMEM budgeting
# --------------------------------------------------------------------------
def _round_up(x, m):
    return -(-x // m) * m


def _vmem_limit_bytes():
    cap = 64 * 1024 * 1024                      # conservative (v7x physical)
    try:
        cap = int(pltpu.get_tpu_info().vmem_capacity_bytes)
    except Exception:
        pass
    # Leave headroom below physical capacity: 64 MiB on v5e/v6e, 48 MiB on v7x.
    return max(32 * 1024 * 1024, min((cap * 3) // 4, 64 * 1024 * 1024))


def _budgets(dtype):
    itemsize = jnp.dtype(dtype).itemsize
    vmem_limit = _vmem_limit_bytes()
    # Per-element VMEM footprint of one grid step:
    #   double-buffered input tile + double-buffered output tile
    #   (2 * 2 * itemsize) + ~3 full-tile f32 temporaries inside the kernel.
    bytes_per_elem = 4 * itemsize + 3 * 4
    block_elems = max(8 * 128,
                      (vmem_limit - _VMEM_MARGIN_BYTES) // bytes_per_elem)
    sub_mult = max(8, 32 // itemsize)           # sublane packing multiple
    return vmem_limit, block_elems, sub_mult


# --------------------------------------------------------------------------
# Kernels
# --------------------------------------------------------------------------
def _rows_kernel(x_ref, y_ref):
    # Block (tile_rows, C): reduce over the lane axis.
    x = x_ref[...].astype(jnp.float32)
    m = jnp.max(x, axis=-1, keepdims=True)
    sumexp = jnp.sum(jnp.exp(x - m), axis=-1, keepdims=True)
    y_ref[...] = (x - (m + jnp.log(sumexp))).astype(y_ref.dtype)


def _nchw_kernel(x_ref, y_ref):
    # Block (tile_b, C, tile_s): reduce over the channel (sublane-side) axis.
    x = x_ref[...].astype(jnp.float32)
    m = jnp.max(x, axis=1, keepdims=True)
    sumexp = jnp.sum(jnp.exp(x - m), axis=1, keepdims=True)
    y_ref[...] = (x - (m + jnp.log(sumexp))).astype(y_ref.dtype)


def _rows_reduce_kernel(x_ref, logz_ref, m_sc, l_sc, *, n_classes, tile_c):
    # Split-C pass 1: running max / sum-exp over class blocks (flash-style).
    k = pl.program_id(1)

    @pl.when(k == 0)
    def _():
        m_sc[...] = jnp.full_like(m_sc, -jnp.inf)
        l_sc[...] = jnp.zeros_like(l_sc)

    x = x_ref[...].astype(jnp.float32)
    col = k * tile_c + jax.lax.broadcasted_iota(jnp.int32, x.shape, 1)
    x = jnp.where(col < n_classes, x, -jnp.inf)       # mask ragged C tail
    m_new = jnp.maximum(m_sc[...], jnp.max(x, axis=-1, keepdims=True))
    l_sc[...] = (l_sc[...] * jnp.exp(m_sc[...] - m_new)
                 + jnp.sum(jnp.exp(x - m_new), axis=-1, keepdims=True))
    m_sc[...] = m_new

    @pl.when(k == pl.num_programs(1) - 1)
    def _():
        logz_ref[...] = m_sc[...] + jnp.log(l_sc[...])


def _rows_apply_kernel(x_ref, logz_ref, y_ref):
    # Split-C pass 2: y = x - log_z (padded class columns are discarded).
    y_ref[...] = (x_ref[...].astype(jnp.float32)
                  - logz_ref[...]).astype(y_ref.dtype)


# --------------------------------------------------------------------------
# Tile selection (VMEM-budgeted, megacore-aware)
# --------------------------------------------------------------------------
def _choose_tile_rows(R, C, block_elems, sub_mult, total_elems):
    r_ceil = _round_up(R, sub_mult)
    rows = max(sub_mult, (block_elems // max(C, 1)) // sub_mult * sub_mult)
    rows = min(rows, r_ceil)
    # Megacore: guarantee >=2 grid steps when there is enough work.
    if (total_elems >= _MEGACORE_SPLIT_MIN_ELEMS and rows >= r_ceil
            and r_ceil > sub_mult):
        rows = max(sub_mult, _round_up(-(-R // 2), sub_mult))
    return rows


def _choose_split_c_tiles(R, C, block_elems, sub_mult):
    tile_c = min(_round_up(C, 128), 4096)
    while tile_c > 128 and sub_mult * tile_c > block_elems:
        tile_c -= 128
    rows = (block_elems // tile_c) // sub_mult * sub_mult
    rows = max(sub_mult, min(rows, _round_up(R, sub_mult)))
    return rows, tile_c


def _choose_tiles_3d(B, C, S, block_elems, total_elems):
    if S < 128:
        # Narrow spatial extent: last dim < 128 lanes -> masked stores are
        # unavoidable without a transpose; keep the layout-preserving path.
        tile_s = S
    else:
        # Lane-dense: tile_s is a multiple of 128, ragged S handled by cdiv
        # grid (only the final block's stores are masked).
        lane_budget = max(128, (block_elems // max(C, 1)) // 128 * 128)
        tile_s = min(max(128, (S // 128) * 128), lane_budget)
    tile_b = max(1, block_elems // max(C * tile_s, 1))
    tile_b = min(tile_b, B)
    # Megacore: guarantee >=2 grid steps when the array is big enough.
    n_s = -(-S // tile_s)
    n_b = -(-B // tile_b)
    if total_elems >= _MEGACORE_SPLIT_MIN_ELEMS and n_s * n_b < 2:
        if tile_s >= 256:
            tile_s = _round_up(tile_s // 2, 128)
        elif tile_b > 1:
            tile_b = -(-tile_b // 2)
    return tile_b, tile_s


# --------------------------------------------------------------------------
# pallas_call wrappers
# --------------------------------------------------------------------------
def _log_softmax_rows_single(x2d, tile_rows, vmem_limit):
    R, C = x2d.shape
    itemsize = jnp.dtype(x2d.dtype).itemsize
    n = R * C
    cost = pl.CostEstimate(flops=5 * n, transcendentals=n + R,
                           bytes_accessed=2 * n * itemsize)
    return pl.pallas_call(
        _rows_kernel,
        out_shape=jax.ShapeDtypeStruct((R, C), x2d.dtype),
        grid_spec=pltpu.PrefetchScalarGridSpec(
            num_scalar_prefetch=0,
            grid=(pl.cdiv(R, tile_rows),),
            in_specs=[pl.BlockSpec((tile_rows, C), lambda i: (i, 0))],
            out_specs=pl.BlockSpec((tile_rows, C), lambda i: (i, 0))),
        compiler_params=pltpu.CompilerParams(
            dimension_semantics=("parallel",),
            vmem_limit_bytes=vmem_limit),
        cost_estimate=cost,
    )(x2d)


def _log_softmax_rows_split_c(x2d, tile_rows, tile_c, vmem_limit):
    R, C = x2d.shape
    itemsize = jnp.dtype(x2d.dtype).itemsize
    n_r = pl.cdiv(R, tile_rows)
    n_c = pl.cdiv(C, tile_c)
    n = R * C
    # Pass 1: log_z = m + log(sum exp(x - m)), streamed over class blocks.
    logz = pl.pallas_call(
        functools.partial(_rows_reduce_kernel, n_classes=C, tile_c=tile_c),
        out_shape=jax.ShapeDtypeStruct((R, 1), jnp.float32),
        grid_spec=pltpu.PrefetchScalarGridSpec(
            num_scalar_prefetch=0,
            grid=(n_r, n_c),
            in_specs=[pl.BlockSpec((tile_rows, tile_c), lambda i, k: (i, k))],
            out_specs=pl.BlockSpec((tile_rows, 1), lambda i, k: (i, 0)),
            scratch_shapes=[pltpu.VMEM((tile_rows, 1), jnp.float32),
                            pltpu.VMEM((tile_rows, 1), jnp.float32)]),
        compiler_params=pltpu.CompilerParams(
            dimension_semantics=("parallel", "arbitrary"),
            vmem_limit_bytes=vmem_limit),
        cost_estimate=pl.CostEstimate(flops=4 * n, transcendentals=n,
                                      bytes_accessed=n * itemsize),
    )(x2d)
    # Pass 2: y = x - log_z.
    return pl.pallas_call(
        _rows_apply_kernel,
        out_shape=jax.ShapeDtypeStruct((R, C), x2d.dtype),
        grid_spec=pltpu.PrefetchScalarGridSpec(
            num_scalar_prefetch=0,
            grid=(n_r, n_c),
            in_specs=[pl.BlockSpec((tile_rows, tile_c), lambda i, k: (i, k)),
                      pl.BlockSpec((tile_rows, 1), lambda i, k: (i, 0))],
            out_specs=pl.BlockSpec((tile_rows, tile_c), lambda i, k: (i, k))),
        compiler_params=pltpu.CompilerParams(
            dimension_semantics=("parallel", "parallel"),
            vmem_limit_bytes=vmem_limit),
        cost_estimate=pl.CostEstimate(flops=n, transcendentals=0,
                                      bytes_accessed=2 * n * itemsize),
    )(x2d, logz)


def _log_softmax_rows(x2d):
    R, C = x2d.shape
    vmem_limit, block_elems, sub_mult = _budgets(x2d.dtype)
    if C * sub_mult <= block_elems:
        tile_rows = _choose_tile_rows(R, C, block_elems, sub_mult, R * C)
        return _log_softmax_rows_single(x2d, tile_rows, vmem_limit)
    # Vocab-scale C: the minimum (sub_mult, C) block does not fit the VMEM
    # budget -> stream class blocks in two passes instead of spilling.
    tile_rows, tile_c = _choose_split_c_tiles(R, C, block_elems, sub_mult)
    return _log_softmax_rows_split_c(x2d, tile_rows, tile_c, vmem_limit)


def _log_softmax_nchw(x3d):
    B, C, S = x3d.shape
    vmem_limit, block_elems, _ = _budgets(x3d.dtype)
    tile_b, tile_s = _choose_tiles_3d(B, C, S, block_elems, B * C * S)
    itemsize = jnp.dtype(x3d.dtype).itemsize
    n = B * C * S
    cost = pl.CostEstimate(flops=5 * n, transcendentals=n + B * S,
                           bytes_accessed=2 * n * itemsize)
    # Spatial-block axis is the outermost grid dim: it usually has the larger
    # extent, so megacore (v7x, 2 TCs) shards it.
    return pl.pallas_call(
        _nchw_kernel,
        out_shape=jax.ShapeDtypeStruct((B, C, S), x3d.dtype),
        grid_spec=pltpu.PrefetchScalarGridSpec(
            num_scalar_prefetch=0,
            grid=(pl.cdiv(S, tile_s), pl.cdiv(B, tile_b)),
            in_specs=[pl.BlockSpec((tile_b, C, tile_s),
                                   lambda j, i: (i, 0, j))],
            out_specs=pl.BlockSpec((tile_b, C, tile_s),
                                   lambda j, i: (i, 0, j))),
        compiler_params=pltpu.CompilerParams(
            dimension_semantics=("parallel", "parallel"),
            vmem_limit_bytes=vmem_limit),
        cost_estimate=cost,
    )(x3d)


def log_softmax_ex(x, axis=1):
    """LogSoftmaxEx.forward: log_softmax over axis=1 (the PyTorch autograd
    Function hardcodes axis=1 regardless of the ctor arg)."""
    if x.ndim < 2:
        raise ValueError("log_softmax_ex expects an input with >= 2 dims")
    if x.ndim == 2:
        # (rows, classes): axis 1 is already the last (lane) axis.
        return _log_softmax_rows(x)
    orig_shape = x.shape
    B, C = x.shape[0], x.shape[1]
    S = 1
    for d in x.shape[2:]:
        S *= d
    _, block_elems, _ = _budgets(x.dtype)
    if C * min(S, 128) <= block_elems:
        # Layout-preserving path: contiguous reshape to (B, C, S), reduce over
        # the channel axis in-kernel (no HBM transpose).
        return _log_softmax_nchw(x.reshape(B, C, S)).reshape(orig_shape)
    # Vocab-scale C with spatial dims: the minimum (1, C, tile_s) block cannot
    # fit VMEM.  Fall back to a transpose + split-C streaming path (the
    # one-time transpose is far cheaper than spilling / failing to compile).
    xt = jnp.moveaxis(x.reshape(B, C, S), 1, 2).reshape(B * S, C)
    yt = _log_softmax_rows(xt)
    return jnp.moveaxis(yt.reshape(B, S, C), 2, 1).reshape(orig_shape)


# --------------------------------------------------------------------------
# Demo / self-check
# --------------------------------------------------------------------------
if __name__ == "__main__":
    key = jax.random.PRNGKey(0)
    k1, k2, k3, k4 = jax.random.split(key, 4)

    # NCHW-style input: batch=2, channels=4 (reduction axis), spatial 16x16.
    x4 = jax.random.normal(k1, (2, 4, 16, 16), dtype=jnp.float32)
    y4 = jax.block_until_ready(log_softmax_ex(x4, axis=1))
    ref4 = jax.nn.log_softmax(x4, axis=1)
    assert y4.shape == x4.shape and y4.dtype == x4.dtype
    assert jnp.max(jnp.abs(y4 - ref4)) < 1e-5

    # NCHW with ragged spatial extent (S = 10*20 = 200 -> lane-dense 128-wide
    # tiles with a cdiv grid; only the tail block's stores are masked).
    x5 = jax.random.normal(k2, (2, 4, 10, 20), dtype=jnp.float32)
    y5 = jax.block_until_ready(log_softmax_ex(x5, axis=1))
    ref5 = jax.nn.log_softmax(x5, axis=1)
    assert y5.shape == x5.shape and y5.dtype == x5.dtype
    assert jnp.max(jnp.abs(y5 - ref5)) < 1e-5

    # 2-D input: rows=8, classes=32 (reduction axis == last axis).
    x2 = jax.random.normal(k3, (8, 32), dtype=jnp.float32)
    y2 = jax.block_until_ready(log_softmax_ex(x2, axis=1))
    ref2 = jax.nn.log_softmax(x2, axis=1)
    assert y2.shape == x2.shape and y2.dtype == x2.dtype
    assert jnp.max(jnp.abs(y2 - ref2)) < 1e-5

    # Exercise the split-C (vocab-scale classes) two-pass path directly with
    # small forced tiles, including a ragged class tail (300 = 2*128 + 44).
    x3 = jax.random.normal(k4, (16, 300), dtype=jnp.float32)
    vmem_limit, _, _ = _budgets(x3.dtype)
    y3 = jax.block_until_ready(
        _log_softmax_rows_split_c(x3, tile_rows=8, tile_c=128,
                                  vmem_limit=vmem_limit))
    ref3 = jax.nn.log_softmax(x3, axis=1)
    assert y3.shape == x3.shape and y3.dtype == x3.dtype
    assert jnp.max(jnp.abs(y3 - ref3)) < 1e-5

    print("KERNEL_OK")
</pallas_src>

<mosaic_0001>
module attributes {stable_mosaic.version = 11 : i64} {
  func.func @_nchw_kernel(%arg0: i32, %arg1: i32, %arg2: memref<2x4x256xf32, #tpu.memory_space<vmem>>, %arg3: memref<2x4x256xf32, #tpu.memory_space<vmem>>) attributes {dimension_semantics = [#tpu.dimension_semantics<parallel>, #tpu.dimension_semantics<parallel>], iteration_bounds = array<i64: 1, 1>, scalar_prefetch = 0 : i64, scratch_operands = 0 : i64, tpu.core_type = #tpu.core_type<tc>, window_params = [{transform_indices = @transform_0, window_bounds = array<i64: 2, 4, 256>}, {transform_indices = @transform_1, window_bounds = array<i64: 2, 4, 256>}]} {
    %c0 = arith.constant 0 : index
    %c0_0 = arith.constant 0 : index
    %c0_1 = arith.constant 0 : index
    %0 = vector.load %arg2[%c0, %c0_0, %c0_1] : memref<2x4x256xf32, #tpu.memory_space<vmem>>, vector<2x4x256xf32>
    %cst = arith.constant dense<0xFF800000> : vector<2x256xf32>
    %1 = vector.multi_reduction <maximumf>, %0, %cst [1] : vector<2x4x256xf32> to vector<2x256xf32>
    %2 = vector.shape_cast %1 : vector<2x256xf32> to vector<2x1x256xf32>
    %3 = vector.broadcast %2 : vector<2x1x256xf32> to vector<2x4x256xf32>
    %4 = arith.subf %0, %3 : vector<2x4x256xf32>
    %5 = math.exp %4 : vector<2x4x256xf32>
    %cst_2 = arith.constant dense<0.000000e+00> : vector<2x256xf32>
    %6 = vector.multi_reduction <add>, %5, %cst_2 [1] : vector<2x4x256xf32> to vector<2x256xf32>
    %7 = vector.shape_cast %6 : vector<2x256xf32> to vector<2x1x256xf32>
    %8 = math.log %7 : vector<2x1x256xf32>
    %9 = arith.addf %2, %8 : vector<2x1x256xf32>
    %10 = vector.broadcast %9 : vector<2x1x256xf32> to vector<2x4x256xf32>
    %11 = arith.subf %0, %10 : vector<2x4x256xf32>
    %c0_3 = arith.constant 0 : index
    %c0_4 = arith.constant 0 : index
    %c0_5 = arith.constant 0 : index
    %12 = vector.load %arg3[%c0_3, %c0_4, %c0_5] : memref<2x4x256xf32, #tpu.memory_space<vmem>>, vector<2x4x256xf32>
    tpu.vector_store %arg3[%c0_3, %c0_4, %c0_5], %11 {strides = array<i32>} : memref<2x4x256xf32, #tpu.memory_space<vmem>>, vector<2x4x256xf32>,
    return
  }
  func.func @transform_0(%arg0: i32, %arg1: i32) -> (i32, i32, i32) {
    %c0_i32 = arith.constant 0 : i32
    %c0_i32_0 = arith.constant 0 : i32
    return %arg1, %c0_i32, %arg0 : i32, i32, i32
  }
  func.func @transform_1(%arg0: i32, %arg1: i32) -> (i32, i32, i32) {
    %c0_i32 = arith.constant 0 : i32
    %c0_i32_0 = arith.constant 0 : i32
    return %arg1, %c0_i32, %arg0 : i32, i32, i32
  }
}

</mosaic_0001>

<bundles_post_ra>
// kernel: tpu_custom_call.1
= control target key start
LH: loop header
LB: loop body
LE: loop exit
PB: predicated region body
PF: predicated region fallthrough
CT: control target
= control target key end

     0   :  { %6 = vsyncpa [#allocation3], 0  ;;  %s281_s0 = inlined_call_operand.hbm [shape: f32[2,4,256], index: 0, kind: input, shape index: {}]   ;;  %s282_s1 = inlined_call_operand.hbm [shape: f32[2,4,256], index: 1, kind: output, shape index: {}]  }
   0x1   :  { %7 = vsyncpa [#allocation4], 0  ;;  %s215_s6 = smov [#allocation2]   ;;  %s167_s10 = scalar_lea.hbm %s281_s0, 256 }
   0x2   :  { %s13_s7 = sshll.u32 %s215_s6, 4  ;;  %p168_p0 = scmp.ne.s32.totalorder %s281_s0, %s167_s10  ;;  %s14_s7 = int_to_ptr.vmem [resolvable:$true] %s13_s7 }
   0x3   :  { %p171_p1 = scmp.lt.u32.totalorder %s167_s10, %s281_s0 }
   0x5   :  { %p173_p2 = pnand %p171_p1, %p168_p0 }
   0x7   :  { %176 = shalt.err (!%p173_p2)
}
   0x8   :  { %s177_s15 = scalar_lea.vmem %s14_s7, 256  ;;  %p182_p4 = scmp.lt.s32.totalorder %s14_s7, %s14_s7 }
   0x9   :  { %p178_p3 = scmp.ne.s32.totalorder %s14_s7, %s177_s15  ;;  %p183_p5 = scmp.lt.s32.totalorder %s177_s15, %s177_s15 }
   0xb   :  { %p184_p6 = por %p183_p5, %p182_p4 }
   0xd   :  { %p185_p7 = pnand %p184_p6, %p178_p3 }
   0xf   :  { %188 = shalt.err (!%p185_p7)
}
  0x10   :  { %s216_s16 = smov 128   ;;  %s217_s17 = smov 8  }
  0x11   :  { %19 = dma.hbm_to_vmem [thread:$0]  %s281_s0, 256, %s14_s7, [#allocation3], %s216_s16, %s216_s16, %s217_s17  }
  0x12   :  { %211 = dma.done.wait [#allocation3], 256  }
  0x13   :  { %212 = vsyncadd [#allocation3], 4294967040  ;;  %vm31_vm0 = vcmask 1043456   ;;  %v244_v0 = vld [vmem:[#allocation2] sm:$0xff]  ;;  %v246_v1 = vld [vmem:[#allocation2 + $0x8] sm:$0xff]  ;;  %s218_s0 = smov [#allocation5]  }
  0x14   :  { %v27_v2 = vcombine.high %v244_v0, %v244_v0  ;;  %v32_v3 = vsel %vm31_vm0, %v244_v0, -inf  ;;  %v28_v4 = vcombine.high %v246_v1, %v246_v1  ;;  %v46_v5 = vsel %vm31_vm0, %v246_v1, -inf  ;;  %s137_s20 = sshll.u32 %s218_s0, 4  ;;  %s138_s20 = int_to_ptr.vmem [resolvable:$true] %s137_s20 }
  0x15   :  { %v33_v6 = vrot.slane %v32_v3, 4  ;;  %v47_v7 = vrot.slane %v46_v5, 4  ;;  %s189_s21 = scalar_lea.vmem %s138_s20, 256  ;;  %p194_p9 = scmp.lt.s32.totalorder %s138_s20, %s138_s20 }
  0x16   :  { %v39_v8 = vsel %vm31_vm0, %v27_v2, -inf  ;;  %v53_v9 = vsel %vm31_vm0, %v28_v4, -inf  ;;  %p190_p8 = scmp.ne.s32.totalorder %s138_s20, %s189_s21  ;;  %p195_p10 = scmp.lt.s32.totalorder %s189_s21, %s189_s21 }
  0x17   :  { %v34_v10 = vmax.f32 %v32_v3, %v33_v6  ;;  %v40_v11 = vrot.slane %v39_v8, 4  ;;  %v48_v12 = vmax.f32 %v46_v5, %v47_v7  ;;  %v54_v13 = vrot.slane %v53_v9, 4 }
  0x18   :  { %p196_p11 = por %p195_p10, %p194_p9 }
  0x19   :  { %v35_v14 = vrot.slane %v34_v10, 2  ;;  %v41_v15 = vmax.f32 %v39_v8, %v40_v11  ;;  %v49_v16 = vrot.slane %v48_v12, 2  ;;  %v55_v17 = vmax.f32 %v53_v9, %v54_v13 }
  0x1a   :  { %p197_p12 = pnand %p196_p11, %p190_p8 }
  0x1b   :  { %v36_v18 = vmax.f32 %v34_v10, %v35_v14  ;;  %v42_v19 = vrot.slane %v41_v15, 2  ;;  %v50_v20 = vmax.f32 %v48_v12, %v49_v16  ;;  %v56_v21 = vrot.slane %v55_v17, 2 }
  0x1d   :  { %v37_v22 = vrot.slane %v36_v18, 1  ;;  %v43_v23 = vmax.f32 %v41_v15, %v42_v19  ;;  %v51_v24 = vrot.slane %v50_v20, 1  ;;  %v57_v25 = vmax.f32 %v55_v17, %v56_v21 }
  0x1f   :  { %v38_v26 = vmax.f32 %v36_v18, %v37_v22  ;;  %v44_v27 = vrot.slane %v43_v23, 1  ;;  %v52_v28 = vmax.f32 %v50_v20, %v51_v24  ;;  %v58_v29 = vrot.slane %v57_v25, 1 }
  0x21   :  { %v45_v30 = vmax.f32 %v43_v23, %v44_v27  ;;  %v59_v31 = vmax.f32 %v57_v25, %v58_v29 }
  0x23   :  { %v64_v32 = vcombine.low %v38_v26, %v45_v30  ;;  %v65_v33 = vcombine.low %v52_v28, %v59_v31 }
  0x25   :  { %v68_v34 = vsub.f32 %v244_v0, %v64_v32  ;;  %v69_v35 = vsub.f32 %v246_v1, %v65_v33 }
  0x27   :  { %v70_v36 = vmul.f32 1.442695, %v68_v34  ;;  %v72_v37 = vmul.f32 1.442695, %v69_v35 }
  0x29   :  { %155 = vpow2.f32 %v70_v36 }
  0x2a   :  { %157 = vpow2.f32 %v72_v37 }
  0x33   :  { %v156_v38 = vpop.eup %155 }
  0x34   :  { %v158_v39 = vpop.eup %157  ;;  %v76_v40 = vcombine.high %v156_v38, %v156_v38  ;;  %v80_v41 = vsel %vm31_vm0, %v156_v38, 0.0 }
  0x35   :  { %v81_v42 = vrot.slane %v80_v41, 4  ;;  %v77_v43 = vcombine.high %v158_v39, %v158_v39  ;;  %v94_v44 = vsel %vm31_vm0, %v158_v39, 0.0 }
  0x36   :  { %v87_v45 = vsel %vm31_vm0, %v76_v40, 0.0  ;;  %v95_v46 = vrot.slane %v94_v44, 4 }
  0x37   :  { %v82_v47 = vadd.f32 %v81_v42, %v80_v41  ;;  %v88_v48 = vrot.slane %v87_v45, 4  ;;  %v101_v49 = vsel %vm31_vm0, %v77_v43, 0.0 }
  0x38   :  { %v96_v50 = vadd.f32 %v95_v46, %v94_v44  ;;  %v102_v51 = vrot.slane %v101_v49, 4 }
  0x39   :  { %v83_v52 = vrot.slane %v82_v47, 2  ;;  %v89_v53 = vadd.f32 %v88_v48, %v87_v45 }
  0x3a   :  { %v97_v54 = vrot.slane %v96_v50, 2  ;;  %v103_v55 = vadd.f32 %v102_v51, %v101_v49 }
  0x3b   :  { %v84_v56 = vadd.f32 %v83_v52, %v82_v47  ;;  %v90_v57 = vrot.slane %v89_v53, 2 }
  0x3c   :  { %v98_v58 = vadd.f32 %v97_v54, %v96_v50  ;;  %v104_v59 = vrot.slane %v103_v55, 2 }
  0x3d   :  { %v85_v60 = vrot.slane %v84_v56, 1  ;;  %v91_v61 = vadd.f32 %v90_v57, %v89_v53 }
  0x3e   :  { %v99_v62 = vrot.slane %v98_v58, 1  ;;  %v105_v63 = vadd.f32 %v104_v59, %v103_v55 }
  0x3f   :  { %v86_v2 = vadd.f32 %v85_v60, %v84_v56  ;;  %v92_v3 = vrot.slane %v91_v61, 1 }
  0x40   :  { %v100_v4 = vadd.f32 %v99_v62, %v98_v58  ;;  %v106_v5 = vrot.slane %v105_v63, 1 }
  0x41   :  { %v93_v6 = vadd.f32 %v92_v3, %v91_v61  ;;  %159 = vlog2.f32 %v86_v2 }
  0x42   :  { %v107_v7 = vadd.f32 %v106_v5, %v105_v63  ;;  %161 = vlog2.f32 %v100_v4 }
  0x43   :  { %163 = vlog2.f32 %v93_v6 }
  0x44   :  { %165 = vlog2.f32 %v107_v7 }
  0x4b   :  { %v160_v8 = vpop.eup %159 }
  0x4c   :  { %v162_v9 = vpop.eup %161  ;;  %v109_v10 = vmul.f32 0.6931472, %v160_v8 }
  0x4d   :  { %v164_v11 = vpop.eup %163  ;;  %v113_v12 = vmul.f32 0.6931472, %v162_v9 }
  0x4e   :  { %v166_v13 = vpop.eup %165  ;;  %v111_v14 = vmul.f32 0.6931472, %v164_v11  ;;  %v116_v15 = vadd.f32 %v109_v10, %v38_v26 }
  0x4f   :  { %v115_v16 = vmul.f32 0.6931472, %v166_v13  ;;  %v118_v17 = vadd.f32 %v113_v12, %v52_v28 }
  0x50   :  { %v117_v18 = vadd.f32 %v111_v14, %v45_v30 }
  0x51   :  { %v119_v19 = vadd.f32 %v115_v16, %v59_v31 }
  0x52   :  { %v124_v20 = vcombine.low %v116_v15, %v117_v18 }
  0x53   :  { %v125_v21 = vcombine.low %v118_v17, %v119_v19 }
  0x54   :  { %v128_v22 = vsub.f32 %v244_v0, %v124_v20 }
  0x55   :  { %v129_v23 = vsub.f32 %v246_v1, %v125_v21 }
  0x56   :  { %130 = vst [vmem:[#allocation5] sm:$0xff] %v128_v22 }
  0x57   :  { %131 = vst [vmem:[#allocation5 + $0x8] sm:$0xff] %v129_v23 }
  0x58   :  { %200 = shalt.err (!%p197_p12)
}
  0x59   :  { %s201_s24 = scalar_lea.hbm %s282_s1, 256 }
  0x5a   :  { %p202_p13 = scmp.ne.s32.totalorder %s282_s1, %s201_s24  ;;  %p205_p0 = scmp.lt.u32.totalorder %s201_s24, %s282_s1 }
  0x5c   :  { %p207_p1 = pnand %p205_p0, %p202_p13 }
  0x5e   :  { %210 = shalt.err (!%p207_p1)
}
  0x5f   :  { %143 = dma.vmem_to_hbm [thread:$0]  %s138_s20, 256, %s282_s1, [#allocation4], %s216_s16, %s216_s16, %s217_s17  }
  0x60   :  { %213 = dma.done.wait [#allocation4], 256  }
  0x61   :  { %214 = vsyncadd [#allocation4], 4294967040 }
  0x62   :  { %147 = vsyncpa [#allocation3], 1 }
  0x63   :  { %148 = vsyncpa [#allocation4], 1 }

</bundles_post_ra>
